<compile_context>
chip_gen: v7x
topology: tpu7x:2x2x1
jax: 0.10.0
libtpu: 0.0.40
codegen_flags: <defaults>
</compile_context>

<pallas_src>
import functools

import jax
import jax.numpy as jnp
from jax.experimental import pallas as pl
from jax.experimental.pallas import tpu as pltpu

STATE_DIM = 4
IN_DIM = STATE_DIM * 2          # 8
HIDDEN = 256
OUT_DIM = 1
NEG_SLOPE = 0.01                # PyTorch leaky_relu default
LANE = 128                      # TPU lane width


def _leaky_relu(x):
    return jnp.where(x >= 0, x, NEG_SLOPE * x)


def _round_up(x, m):
    return (x + m - 1) // m * m


def mlp_kernel(s_ref, a_ref, w1a_ref, w1b_ref, b1_ref, w2_ref, b2_ref, o_ref):
    """One batch tile, transposed layout (batch on the lane axis).

    s_ref  : (4, TB)   f32   states^T
    a_ref  : (1, TB)   int32 actions
    w1a_ref: (256, 4)  f32   W1[:, 0:4]   (action == 0 block)
    w1b_ref: (256, 4)  f32   W1[:, 4:8]   (action == 1 block)
    b1_ref : (256, 1)  f32
    w2_ref : (256, 1)  f32   W2^T as a column
    b2_ref : (1, 1)    f32   (SMEM scalar)
    o_ref  : (1, TB)   f32   lane-dense output
    """
    sT = s_ref[...]                                   # (4, TB)
    a = a_ref[...]                                    # (1, TB) int32

    # Layer 1, fused with the one-hot-block encoding:
    #   h^T = W1[:, a*4:(a+1)*4] @ s^T
    h0 = jnp.dot(w1a_ref[...], sT, preferred_element_type=jnp.float32)  # (256, TB)
    h1 = jnp.dot(w1b_ref[...], sT, preferred_element_type=jnp.float32)  # (256, TB)
    h = jnp.where(a == 0, h0, h1)                     # per-column select on action
    h = _leaky_relu(h + b1_ref[...])                  # bias column broadcast over lanes

    # Layer 2 (256 -> 1): VPU multiply + cross-sublane reduction.
    # Result is naturally a lane-dense (1, TB) row -- no MXU, no relayout.
    o = jnp.sum(h * w2_ref[...], axis=0, keepdims=True) + b2_ref[0, 0]  # (1, TB)
    o_ref[...] = _leaky_relu(o)


@functools.partial(jax.jit, static_argnames=("block_b",))
def nn_forward(states, actions, w1, b1, w2, b2, *, block_b=2048):
    """states (B, 4) f32, actions (B,) int -> (B, 1) f32.

    Weights in PyTorch layout: w1 (256, 8), b1 (256,), w2 (1, 256), b2 (1,).
    """
    B = states.shape[0]
    # Batch tile: multiple of 128 (lane-dense), capped so the (256, TB) f32
    # hidden intermediates fit the scoped VMEM limit on all generations.
    TB = _round_up(min(block_b, _round_up(B, LANE)), LANE)
    Bp = _round_up(B, TB)

    states = states.astype(jnp.float32)
    actions = actions.astype(jnp.int32)
    pad = Bp - B
    if pad:
        states = jnp.pad(states, ((0, pad), (0, 0)))
        actions = jnp.pad(actions, ((0, pad),))

    # Lane-dense streaming layout: batch on the lane axis.  (Layout plumbing
    # done once in the wrapper; a real training loop would keep this layout.)
    states_t = states.T                               # (4, Bp)
    actions_t = actions.reshape(1, Bp)                # (1, Bp)

    # One-time weight re-layout (outside the kernel).
    w1a = w1[:, :STATE_DIM]                           # (256, 4)
    w1b = w1[:, STATE_DIM:]                           # (256, 4)
    b1c = b1.reshape(HIDDEN, 1)                       # (256, 1)
    w2c = w2.reshape(HIDDEN, 1)                       # (256, 1)
    b2s = b2.reshape(1, 1)                            # (1, 1) -> SMEM

    grid = (Bp // TB,)
    out = pl.pallas_call(
        mlp_kernel,
        out_shape=jax.ShapeDtypeStruct((1, Bp), jnp.float32),
        grid=grid,
        in_specs=[
            pl.BlockSpec((STATE_DIM, TB), lambda i: (0, i)),   # states^T, streamed
            pl.BlockSpec((1, TB), lambda i: (0, i)),           # actions, streamed
            pl.BlockSpec((HIDDEN, STATE_DIM), lambda i: (0, 0)),  # W1a resident
            pl.BlockSpec((HIDDEN, STATE_DIM), lambda i: (0, 0)),  # W1b resident
            pl.BlockSpec((HIDDEN, 1), lambda i: (0, 0)),          # b1 resident
            pl.BlockSpec((HIDDEN, 1), lambda i: (0, 0)),          # W2 resident
            pl.BlockSpec(memory_space=pltpu.MemorySpace.SMEM),    # b2 scalar
        ],
        out_specs=pl.BlockSpec((1, TB), lambda i: (0, i)),        # lane-dense output
        compiler_params=pltpu.CompilerParams(
            dimension_semantics=("parallel",),        # megacore-shard the batch axis
            vmem_limit_bytes=32 * 1024 * 1024,
        ),
    )(states_t, actions_t, w1a, w1b, b1c, w2c, b2s)

    return out[0, :B].reshape(B, OUT_DIM)


def encode_state_action(s, a):
    """Plain-JAX replica of NN.__call__ glue (used only for the reference check);
    the Pallas kernel fuses this encoding internally."""
    x = jnp.zeros((IN_DIM,), dtype=jnp.float32)
    return jax.lax.dynamic_update_slice(x, s.astype(jnp.float32), (a * STATE_DIM,))


def init_params(key):
    """kaiming_uniform_ on weights (explicit call, default args, as in the spec's
    init_weights); PyTorch-default Linear bias init.  Torch (out, in) layout."""
    k1, k2, k3, k4 = jax.random.split(key, 4)

    def kaiming_uniform(k, fan_out, fan_in):
        bound = jnp.sqrt(6.0 / fan_in)   # gain=sqrt(2), bound = gain*sqrt(3/fan_in)
        return jax.random.uniform(k, (fan_out, fan_in), jnp.float32, -bound, bound)

    def bias_init(k, fan_in, fan_out):
        bound = 1.0 / jnp.sqrt(fan_in)
        return jax.random.uniform(k, (fan_out,), jnp.float32, -bound, bound)

    w1 = kaiming_uniform(k1, HIDDEN, IN_DIM)     # (256, 8)
    b1 = bias_init(k2, IN_DIM, HIDDEN)           # (256,)
    w2 = kaiming_uniform(k3, OUT_DIM, HIDDEN)    # (1, 256)
    b2 = bias_init(k4, HIDDEN, OUT_DIM)          # (1,)
    return w1, b1, w2, b2


if __name__ == "__main__":
    key = jax.random.PRNGKey(0)
    kp, ks, ka = jax.random.split(key, 3)

    w1, b1, w2, b2 = init_params(kp)

    # Small batch of (state, action) pairs; non-multiple of 128 to exercise
    # padding, and block_b=128 to exercise a multi-step grid.
    B = 200
    states = jax.random.normal(ks, (B, STATE_DIM), dtype=jnp.float32)
    actions = jax.random.randint(ka, (B,), 0, 2)

    out = nn_forward(states, actions, w1, b1, w2, b2, block_b=128)
    jax.block_until_ready(out)

    # Reference in plain JAX (replicating NN.__call__ + forward).
    x = jax.vmap(encode_state_action)(states, actions)             # (B, 8)
    ref_h = _leaky_relu(x @ w1.T + b1[None, :])                    # (B, 256)
    ref = _leaky_relu(ref_h @ w2.T + b2[None, :])                  # (B, 1)

    assert out.shape == (B, OUT_DIM)
    assert jnp.allclose(out, ref, atol=1e-4, rtol=1e-5), float(
        jnp.max(jnp.abs(out - ref))
    )

    print("KERNEL_OK")
</pallas_src>

<mosaic_0001>
module attributes {stable_mosaic.version = 11 : i64} {
  func.func @mlp_kernel(%arg0: i32, %arg1: memref<4x128xf32, #tpu.memory_space<vmem>>, %arg2: memref<1x128xi32, #tpu.memory_space<vmem>>, %arg3: memref<256x4xf32, #tpu.memory_space<vmem>>, %arg4: memref<256x4xf32, #tpu.memory_space<vmem>>, %arg5: memref<256x1xf32, #tpu.memory_space<vmem>>, %arg6: memref<256x1xf32, #tpu.memory_space<vmem>>, %arg7: memref<1x1xf32, #tpu.memory_space<smem>>, %arg8: memref<1x128xf32, #tpu.memory_space<vmem>>) attributes {dimension_semantics = [#tpu.dimension_semantics<parallel>], iteration_bounds = array<i64: 2>, scalar_prefetch = 0 : i64, scratch_operands = 0 : i64, tpu.core_type = #tpu.core_type<tc>, window_params = [{transform_indices = @transform_0, window_bounds = array<i64: 4, 128>}, {transform_indices = @transform_1, window_bounds = array<i64: 1, 128>}, {pipeline_mode = #tpu.pipeline_mode<synchronous>, transform_indices = @transform_2, window_bounds = array<i64: 256, 4>}, {pipeline_mode = #tpu.pipeline_mode<synchronous>, transform_indices = @transform_3, window_bounds = array<i64: 256, 4>}, {pipeline_mode = #tpu.pipeline_mode<synchronous>, transform_indices = @transform_4, window_bounds = array<i64: 256, 1>}, {pipeline_mode = #tpu.pipeline_mode<synchronous>, transform_indices = @transform_5, window_bounds = array<i64: 256, 1>}, {transform_indices = @transform_6, window_bounds = array<i64: 1, 1>}, {transform_indices = @transform_7, window_bounds = array<i64: 1, 128>}]} {
    %c0 = arith.constant 0 : index
    %c0_0 = arith.constant 0 : index
    %0 = vector.load %arg1[%c0, %c0_0] : memref<4x128xf32, #tpu.memory_space<vmem>>, vector<4x128xf32>
    %c0_1 = arith.constant 0 : index
    %c0_2 = arith.constant 0 : index
    %1 = vector.load %arg2[%c0_1, %c0_2] : memref<1x128xi32, #tpu.memory_space<vmem>>, vector<1x128xi32>
    %c0_3 = arith.constant 0 : index
    %c0_4 = arith.constant 0 : index
    %2 = vector.load %arg3[%c0_3, %c0_4] : memref<256x4xf32, #tpu.memory_space<vmem>>, vector<256x4xf32>
    %cst = arith.constant dense<0.000000e+00> : vector<256x128xf32>
    %3 = tpu.matmul %2, %0, %cst {dimension_numbers = #tpu.dot_dimension_numbers<[1], [0], [0], [1], [0, 0, 1, 1], [], []>} : vector<256x4xf32>, vector<4x128xf32>, vector<256x128xf32> -> vector<256x128xf32>
    %c0_5 = arith.constant 0 : index
    %c0_6 = arith.constant 0 : index
    %4 = vector.load %arg4[%c0_5, %c0_6] : memref<256x4xf32, #tpu.memory_space<vmem>>, vector<256x4xf32>
    %cst_7 = arith.constant dense<0.000000e+00> : vector<256x128xf32>
    %5 = tpu.matmul %4, %0, %cst_7 {dimension_numbers = #tpu.dot_dimension_numbers<[1], [0], [0], [1], [0, 0, 1, 1], [], []>} : vector<256x4xf32>, vector<4x128xf32>, vector<256x128xf32> -> vector<256x128xf32>
    %c0_i32 = arith.constant 0 : i32
    %6 = vector.broadcast %c0_i32 : i32 to vector<1x128xi32>
    %7 = arith.cmpi eq, %1, %6 : vector<1x128xi32>
    %8 = vector.shape_cast %7 : vector<1x128xi1> to vector<1x128xi1>
    %9 = vector.broadcast %8 : vector<1x128xi1> to vector<256x128xi1>
    %10 = arith.select %9, %3, %5 : vector<256x128xi1>, vector<256x128xf32>
    %c0_8 = arith.constant 0 : index
    %c0_9 = arith.constant 0 : index
    %11 = vector.load %arg5[%c0_8, %c0_9] : memref<256x1xf32, #tpu.memory_space<vmem>>, vector<256x1xf32>
    %12 = vector.broadcast %11 : vector<256x1xf32> to vector<256x128xf32>
    %13 = arith.addf %10, %12 : vector<256x128xf32>
    %cst_10 = arith.constant 0.000000e+00 : f32
    %14 = vector.broadcast %cst_10 : f32 to vector<256x128xf32>
    %15 = arith.cmpf oge, %13, %14 : vector<256x128xf32>
    %cst_11 = arith.constant 0.00999999977 : f32
    %16 = vector.broadcast %cst_11 : f32 to vector<256x128xf32>
    %17 = arith.mulf %16, %13 : vector<256x128xf32>
    %18 = arith.select %15, %13, %17 : vector<256x128xi1>, vector<256x128xf32>
    %c0_12 = arith.constant 0 : index
    %c0_13 = arith.constant 0 : index
    %19 = vector.load %arg6[%c0_12, %c0_13] : memref<256x1xf32, #tpu.memory_space<vmem>>, vector<256x1xf32>
    %20 = vector.broadcast %19 : vector<256x1xf32> to vector<256x128xf32>
    %21 = arith.mulf %18, %20 : vector<256x128xf32>
    %cst_14 = arith.constant dense<0.000000e+00> : vector<128xf32>
    %22 = vector.multi_reduction <add>, %21, %cst_14 [0] : vector<256x128xf32> to vector<128xf32>
    %23 = vector.shape_cast %22 : vector<128xf32> to vector<1x128xf32>
    %c0_15 = arith.constant 0 : index
    %c0_16 = arith.constant 0 : index
    %24 = memref.load %arg7[%c0_15, %c0_16] : memref<1x1xf32, #tpu.memory_space<smem>>
    %25 = vector.broadcast %24 : f32 to vector<1x128xf32>
    %26 = arith.addf %23, %25 : vector<1x128xf32>
    %cst_17 = arith.constant 0.000000e+00 : f32
    %27 = vector.broadcast %cst_17 : f32 to vector<1x128xf32>
    %28 = arith.cmpf oge, %26, %27 : vector<1x128xf32>
    %cst_18 = arith.constant 0.00999999977 : f32
    %29 = vector.broadcast %cst_18 : f32 to vector<1x128xf32>
    %30 = arith.mulf %29, %26 : vector<1x128xf32>
    %31 = arith.select %28, %26, %30 : vector<1x128xi1>, vector<1x128xf32>
    %c0_19 = arith.constant 0 : index
    %c0_20 = arith.constant 0 : index
    %32 = vector.load %arg8[%c0_19, %c0_20] : memref<1x128xf32, #tpu.memory_space<vmem>>, vector<1x128xf32>
    tpu.vector_store %arg8[%c0_19, %c0_20], %31 {strides = array<i32>} : memref<1x128xf32, #tpu.memory_space<vmem>>, vector<1x128xf32>,
    return
  }
  func.func @transform_0(%arg0: i32) -> (i32, i32) {
    %c0_i32 = arith.constant 0 : i32
    %c0_i32_0 = arith.constant 0 : i32
    return %c0_i32, %arg0 : i32, i32
  }
  func.func @transform_1(%arg0: i32) -> (i32, i32) {
    %c0_i32 = arith.constant 0 : i32
    %c0_i32_0 = arith.constant 0 : i32
    return %c0_i32, %arg0 : i32, i32
  }
  func.func @transform_2(%arg0: i32) -> (i32, i32) {
    %c0_i32 = arith.constant 0 : i32
    %c0_i32_0 = arith.constant 0 : i32
    %c0_i32_1 = arith.constant 0 : i32
    return %c0_i32, %c0_i32_0 : i32, i32
  }
  func.func @transform_3(%arg0: i32) -> (i32, i32) {
    %c0_i32 = arith.constant 0 : i32
    %c0_i32_0 = arith.constant 0 : i32
    %c0_i32_1 = arith.constant 0 : i32
    return %c0_i32, %c0_i32_0 : i32, i32
  }
  func.func @transform_4(%arg0: i32) -> (i32, i32) {
    %c0_i32 = arith.constant 0 : i32
    %c0_i32_0 = arith.constant 0 : i32
    %c0_i32_1 = arith.constant 0 : i32
    return %c0_i32, %c0_i32_0 : i32, i32
  }
  func.func @transform_5(%arg0: i32) -> (i32, i32) {
    %c0_i32 = arith.constant 0 : i32
    %c0_i32_0 = arith.constant 0 : i32
    %c0_i32_1 = arith.constant 0 : i32
    return %c0_i32, %c0_i32_0 : i32, i32
  }
  func.func @transform_6(%arg0: i32) -> (i32, i32) {
    %c0_i32 = arith.constant 0 : i32
    %c0_i32_0 = arith.constant 0 : i32
    %c0_i32_1 = arith.constant 0 : i32
    return %c0_i32, %c0_i32_0 : i32, i32
  }
  func.func @transform_7(%arg0: i32) -> (i32, i32) {
    %c0_i32 = arith.constant 0 : i32
    %c0_i32_0 = arith.constant 0 : i32
    return %c0_i32, %arg0 : i32, i32
  }
}

</mosaic_0001>

<bundles_post_ra>
// kernel: nn_forward.1
= control target key start
LH: loop header
LB: loop body
LE: loop exit
PB: predicated region body
PF: predicated region fallthrough
CT: control target
= control target key end

     0   :  { %s1986_s26 = smov 0   ;;  %s2691_s0 = inlined_call_operand.vmem [shape: f32[4,256], index: 0, kind: input, shape index: {}]   ;;  %s2692_s1 = inlined_call_operand.vmem [shape: s32[1,256], index: 1, kind: input, shape index: {}]   ;;  %s2693_s2 = inlined_call_operand.vmem [shape: f32[256,4], index: 2, kind: input, shape index: {}]   ;;  %s2694_s3 = inlined_call_operand.vmem [shape: f32[256,4], index: 3, kind: input, shape index: {}]   ;;  %s2695_s4 = inlined_call_operand.vmem [shape: f32[256,1], index: 4, kind: input, shape index: {}]   ;;  %s2696_s5 = inlined_call_operand.vmem [shape: f32[256,1], index: 5, kind: input, shape index: {}]   ;;  %s2697_s6 = inlined_call_operand.<no memory space> [shape: f32[1,1], index: 6, kind: input, shape index: {}]   ;;  %s2698_s7 = inlined_call_operand.vmem [shape: f32[1,256], index: 7, kind: output, shape index: {}]  }
   0x1   :  { %12 = sst [smem:[#allocation2]] %s2697_s6 }
   0x2 LB: > { %s1683_s27 = sadd.s32 4294967295, %s1940_s26   ;;  %p1687_p0 = scmp.ge.s32.totalorder %s1940_s26, 1  ;;  %s1940_s26 = sphi %s1986_s26, %s18_s26  }
   0x3   : > { %p245_p1 = scmp.lt.s32.totalorder %s1940_s26, 3 }
   0x5   : > { %p246_p2 = pnand %p1687_p0, %p245_p1 }
   0x6   : > { %p277_p3 = scmp.lt.s32.totalorder (!%p246_p2), %s1683_s27, 1  ;;  %v1041_v0 = vld [vmem:[%s2695_s4 + $0x10] sm:$0xff] (!%p246_p2)  ;;  %v1039_v1 = vld [vmem:[%s2695_s4] sm:$0xff] (!%p246_p2)  ;;  %v1942_v2 = vmov (!%p246_p2), 0   ;;  %vm321_vm0 = vcmask (!%p246_p2), 31744   ;;  %v1042_v5 = vld [vmem:[%s2695_s4 + $0x18] sm:$0xff] (!%p246_p2) }
   0x7   : > { %249 = sbr.rel (%p246_p2) target bundleno = 323 (0x143), region = 48  ;;  %1933 = vset.pattern.permute.xlu1 (!%p246_p2), %v1942_v2  ;;  %1932 = vset.pattern.permute.xlu0 (!%p246_p2), %v1942_v2  ;;  %v289_v3 = vld [vmem:[%s2693_s2] sm:$0xff] (!%p246_p2)  ;;  %v1040_v6 = vld [vmem:[%s2695_s4 + $0x8] sm:$0xff] (!%p246_p2)  ;;  %vm418_vm1 = vcmask (!%p246_p2), 1043456   ;;  %v291_v14 = vld [vmem:[%s2693_s2 + $0x10] sm:$0xff] (!%p246_p2)  ;;  %s1620_s25 = sld [smem:[#allocation2]] (!%p246_p2) }
   0x8   : > { %v647_v4 = vld [vmem:[%s2694_s3] sm:$0xff] (!%p246_p2)  ;;  %1083 = vperm.xlu1 (!%p246_p2), %1933, %v1041_v0   ;;  %1073 = vperm.xlu0 (!%p246_p2), %1932, %v1039_v1   ;;  %v290_v10 = vld [vmem:[%s2693_s2 + $0x8] sm:$0xff] (!%p246_p2)  ;;  %v649_v15 = vld [vmem:[%s2694_s3 + $0x10] sm:$0xff] (!%p246_p2) }
   0x9   : > { %1825 = vmatprep.mubr.msk.f32.mxu0 (!%p246_p2), %vm321_vm0, %v289_v3  ;;  %1875 = vmatprep.mubr.msk.f32.mxu1 (!%p246_p2), %vm321_vm0, %v647_v4  ;;  %v648_v11 = vld [vmem:[%s2694_s3 + $0x8] sm:$0xff] (!%p246_p2)  ;;  %v1043_v13 = vld [vmem:[%s2695_s4 + $0x20] sm:$0xff] (!%p246_p2)  ;;  %v292_v16 = vld [vmem:[%s2693_s2 + $0x18] sm:$0xff] (!%p246_p2) }
   0xa   : > { %v1044_v12 = vld [vmem:[%s2695_s4 + $0x28] sm:$0xff] (!%p246_p2)  ;;  %v650_v17 = vld [vmem:[%s2694_s3 + $0x18] sm:$0xff] (!%p246_p2)  ;;  %v1045_v19 = vld [vmem:[%s2695_s4 + $0x30] sm:$0xff] (!%p246_p2) }
   0xb   : > { %v1046_v18 = vld [vmem:[%s2695_s4 + $0x38] sm:$0xff] (!%p246_p2)  ;;  %v293_v20 = vld [vmem:[%s2693_s2 + $0x20] sm:$0xff] (!%p246_p2)  ;;  %v294_v22 = vld [vmem:[%s2693_s2 + $0x28] sm:$0xff] (!%p246_p2) }
   0xc   : > { %1088 = vperm.xlu1 (!%p246_p2), %1933, %v1042_v5   ;;  %1078 = vperm.xlu0 (!%p246_p2), %1932, %v1040_v6   ;;  %v651_v21 = vld [vmem:[%s2694_s3 + $0x20] sm:$0xff] (!%p246_p2)  ;;  %v652_v23 = vld [vmem:[%s2694_s3 + $0x28] sm:$0xff] (!%p246_p2)  ;;  %v295_v26 = vld [vmem:[%s2693_s2 + $0x30] sm:$0xff] (!%p246_p2) }
   0xd   : > { %v1048_v24 = vld [vmem:[%s2695_s4 + $0x48] sm:$0xff] (!%p246_p2)  ;;  %v1047_v25 = vld [vmem:[%s2695_s4 + $0x40] sm:$0xff] (!%p246_p2)  ;;  %v653_v27 = vld [vmem:[%s2694_s3 + $0x30] sm:$0xff] (!%p246_p2) }
   0xe   : > { %s2700_s27 = smov (!%p277_p3, %s1683_s27), 1  ;;  %v296_v28 = vld [vmem:[%s2693_s2 + $0x38] sm:$0xff]  ;;  %v1049_v31 = vld [vmem:[%s2695_s4 + $0x50] sm:$0xff]  ;;  %v297_v32 = vld [vmem:[%s2693_s2 + $0x40] sm:$0xff] }
   0xf   : > { %s283_s18 = scalar_lea.vmem %s2692_s1, %s2700_s27  ;;  %s1688_s19 = sshll.u32 %s2700_s27, 2  ;;  %v654_v29 = vld [vmem:[%s2694_s3 + $0x38] sm:$0xff]  ;;  %v655_v33 = vld [vmem:[%s2694_s3 + $0x40] sm:$0xff]  ;;  %v298_v34 = vld [vmem:[%s2693_s2 + $0x48] sm:$0xff] }
  0x10   : > { %v288_v7 = vld [vmem:[%s283_s18] sm:$0x1]  ;;  %s280_s22 = scalar_lea.vmem %s2691_s0, %s1688_s19  ;;  %1098 = vperm.xlu1 %1933, %v1044_v12   ;;  %1093 = vperm.xlu0 %1932, %v1043_v13   ;;  %v1050_v30 = vld [vmem:[%s2695_s4 + $0x58] sm:$0xff]  ;;  %v656_v35 = vld [vmem:[%s2694_s3 + $0x48] sm:$0xff]  ;;  %s286_s6 = scalar_lea.vmem %s2698_s7, %s2700_s27 }
  0x11   : > { %vm1000_vm2 = vcmp.eq.s32.totalorder %v288_v7, 0  ;;  %v287_v9 = vld [vmem:[%s280_s22] sm:$0xf]  ;;  %v1052_v36 = vld [vmem:[%s2695_s4 + $0x68] sm:$0xff]  ;;  %v299_v38 = vld [vmem:[%s2693_s2 + $0x50] sm:$0xff] }
  0x12   : > { %v2024_v8 = vsel %vm1000_vm2, 1, %v1942_v2  ;;  %1823 = vmatprep.subr.msk.mxu0 %vm418_vm1, %v287_v9  ;;  %1873 = vmatprep.subr.msk.mxu1 %vm418_vm1, %v287_v9  ;;  %v1051_v37 = vld [vmem:[%s2695_s4 + $0x60] sm:$0xff]  ;;  %v657_v39 = vld [vmem:[%s2694_s3 + $0x50] sm:$0xff]  ;;  %v300_v40 = vld [vmem:[%s2693_s2 + $0x58] sm:$0xff] }
  0x13   : > { %1824 = vmatpush3.msk.msra.mxu0 %vm418_vm1, %v287_v9  ;;  %1874 = vmatpush3.msk.msra.mxu1 %vm418_vm1, %v287_v9  ;;  %v658_v41 = vld [vmem:[%s2694_s3 + $0x58] sm:$0xff]  ;;  %v1053_v43 = vld [vmem:[%s2695_s4 + $0x70] sm:$0xff]  ;;  %v301_v44 = vld [vmem:[%s2693_s2 + $0x60] sm:$0xff] }
  0x14   : > { %1826 = vmatmul.mubr.msk.f32.vlgmr.msra.gmra.mrb[0].mxu0 %vm321_vm0, %v290_v10  ;;  %1876 = vmatmul.mubr.msk.f32.vlgmr.msra.gmra.mrb[0].mxu1 %vm321_vm0, %v648_v11  ;;  %v1054_v42 = vld [vmem:[%s2695_s4 + $0x78] sm:$0xff]  ;;  %v659_v45 = vld [vmem:[%s2694_s3 + $0x60] sm:$0xff]  ;;  %v302_v46 = vld [vmem:[%s2693_s2 + $0x68] sm:$0xff] }
  0x15   : > { %1828 = vmatprep.mubr.msk.f32.mxu0 %vm321_vm0, %v291_v14  ;;  %1878 = vmatprep.mubr.msk.f32.mxu1 %vm321_vm0, %v649_v15  ;;  %v660_v47 = vld [vmem:[%s2694_s3 + $0x68] sm:$0xff]  ;;  %v1055_v49 = vld [vmem:[%s2695_s4 + $0x80] sm:$0xff]  ;;  %v303_v50 = vld [vmem:[%s2693_s2 + $0x70] sm:$0xff] }
  0x16   : > { %1108 = vperm.xlu1 %1933, %v1046_v18   ;;  %1103 = vperm.xlu0 %1932, %v1045_v19   ;;  %v1056_v48 = vld [vmem:[%s2695_s4 + $0x88] sm:$0xff]  ;;  %v661_v51 = vld [vmem:[%s2694_s3 + $0x70] sm:$0xff]  ;;  %v304_v52 = vld [vmem:[%s2693_s2 + $0x78] sm:$0xff] }
  0x17   : > { %v662_v53 = vld [vmem:[%s2694_s3 + $0x78] sm:$0xff]  ;;  %v1057_v55 = vld [vmem:[%s2695_s4 + $0x90] sm:$0xff]  ;;  %v305_v56 = vld [vmem:[%s2693_s2 + $0x80] sm:$0xff] }
  0x18   : > { %1829 = vmatmul.mubr.msk.f32.gmra.mrb[2].mxu0 %vm321_vm0, %v292_v16  ;;  %1879 = vmatmul.mubr.msk.f32.gmra.mrb[2].mxu1 %vm321_vm0, %v650_v17  ;;  %v1058_v54 = vld [vmem:[%s2695_s4 + $0x98] sm:$0xff]  ;;  %v663_v57 = vld [vmem:[%s2694_s3 + $0x80] sm:$0xff]  ;;  %v306_v58 = vld [vmem:[%s2693_s2 + $0x88] sm:$0xff] }
  0x19   : > { %1831 = vmatprep.mubr.msk.f32.mxu0 %vm321_vm0, %v293_v20  ;;  %1881 = vmatprep.mubr.msk.f32.mxu1 %vm321_vm0, %v651_v21  ;;  %v664_v59 = vld [vmem:[%s2694_s3 + $0x88] sm:$0xff]  ;;  %v1059_v61 = vld [vmem:[%s2695_s4 + $0xa0] sm:$0xff]  ;;  %v307_v62 = vld [vmem:[%s2693_s2 + $0x90] sm:$0xff] }
  0x1a   : > { %1118 = vperm.xlu1 %1933, %v1048_v24   ;;  %1113 = vperm.xlu0 %1932, %v1047_v25   ;;  %v1060_v60 = vld [vmem:[%s2695_s4 + $0xa8] sm:$0xff]  ;;  %v665_v63 = vld [vmem:[%s2694_s3 + $0x90] sm:$0xff]  ;;  %v308_v0 = vld [vmem:[%s2693_s2 + $0x98] sm:$0xff] }
  0x1b   : > { %v666_v1 = vld [vmem:[%s2694_s3 + $0x98] sm:$0xff]  ;;  %v1061_v3 = vld [vmem:[%s2695_s4 + $0xb0] sm:$0xff]  ;;  %v309_v4 = vld [vmem:[%s2693_s2 + $0xa0] sm:$0xff] }
  0x1c   : > { %1832 = vmatmul.mubr.msk.f32.gmra.mrb[4].mxu0 %vm321_vm0, %v294_v22  ;;  %1882 = vmatmul.mubr.msk.f32.gmra.mrb[4].mxu1 %vm321_vm0, %v652_v23  ;;  %v1062_v2 = vld [vmem:[%s2695_s4 + $0xb8] sm:$0xff]  ;;  %v667_v5 = vld [vmem:[%s2694_s3 + $0xa0] sm:$0xff]  ;;  %v310_v6 = vld [vmem:[%s2693_s2 + $0xa8] sm:$0xff] }
  0x1d   : > { %1834 = vmatprep.mubr.msk.f32.mxu0 %vm321_vm0, %v295_v26  ;;  %1884 = vmatprep.mubr.msk.f32.mxu1 %vm321_vm0, %v653_v27  ;;  %v668_v7 = vld [vmem:[%s2694_s3 + $0xa8] sm:$0xff]  ;;  %v1063_v10 = vld [vmem:[%s2695_s4 + $0xc0] sm:$0xff]  ;;  %v311_v11 = vld [vmem:[%s2693_s2 + $0xb0] sm:$0xff] }
  0x1e   : > { %1128 = vperm.xlu1 %1933, %v1050_v30   ;;  %1123 = vperm.xlu0 %1932, %v1049_v31   ;;  %v1064_v9 = vld [vmem:[%s2695_s4 + $0xc8] sm:$0xff]  ;;  %v669_v12 = vld [vmem:[%s2694_s3 + $0xb0] sm:$0xff]  ;;  %v312_v13 = vld [vmem:[%s2693_s2 + $0xb8] sm:$0xff] }
  0x1f   : > { %v670_v14 = vld [vmem:[%s2694_s3 + $0xb8] sm:$0xff]  ;;  %v1065_v16 = vld [vmem:[%s2695_s4 + $0xd0] sm:$0xff]  ;;  %v313_v17 = vld [vmem:[%s2693_s2 + $0xc0] sm:$0xff] }
  0x20   : > { %1835 = vmatmul.mubr.msk.f32.gmra.mrb[6].mxu0 %vm321_vm0, %v296_v28  ;;  %1885 = vmatmul.mubr.msk.f32.gmra.mrb[6].mxu1 %vm321_vm0, %v654_v29  ;;  %v1066_v15 = vld [vmem:[%s2695_s4 + $0xd8] sm:$0xff]  ;;  %v671_v18 = vld [vmem:[%s2694_s3 + $0xc0] sm:$0xff]  ;;  %v314_v19 = vld [vmem:[%s2693_s2 + $0xc8] sm:$0xff] }
  0x21   : > { %1837 = vmatprep.mubr.msk.f32.mxu0 %vm321_vm0, %v297_v32  ;;  %1887 = vmatprep.mubr.msk.f32.mxu1 %vm321_vm0, %v655_v33  ;;  %v672_v20 = vld [vmem:[%s2694_s3 + $0xc8] sm:$0xff]  ;;  %v1359_v22 = vld [vmem:[%s2696_s5] sm:$0xff]  ;;  %v315_v23 = vld [vmem:[%s2693_s2 + $0xd0] sm:$0xff] }
  0x22   : > { %1138 = vperm.xlu1 %1933, %v1052_v36   ;;  %1133 = vperm.xlu0 %1932, %v1051_v37   ;;  %v1360_v21 = vld [vmem:[%s2696_s5 + $0x8] sm:$0xff]  ;;  %v673_v24 = vld [vmem:[%s2694_s3 + $0xd0] sm:$0xff]  ;;  %v316_v25 = vld [vmem:[%s2693_s2 + $0xd8] sm:$0xff] }
  0x23   : > { %v674_v26 = vld [vmem:[%s2694_s3 + $0xd8] sm:$0xff]  ;;  %v1361_v28 = vld [vmem:[%s2696_s5 + $0x10] sm:$0xff]  ;;  %v317_v29 = vld [vmem:[%s2693_s2 + $0xe0] sm:$0xff] }
  0x24   : > { %1838 = vmatmul.mubr.msk.f32.gmra.mrb[8].mxu0 %vm321_vm0, %v298_v34  ;;  %1888 = vmatmul.mubr.msk.f32.gmra.mrb[8].mxu1 %vm321_vm0, %v656_v35  ;;  %v1362_v27 = vld [vmem:[%s2696_s5 + $0x18] sm:$0xff]  ;;  %v675_v30 = vld [vmem:[%s2694_s3 + $0xe0] sm:$0xff]  ;;  %v318_v31 = vld [vmem:[%s2693_s2 + $0xe8] sm:$0xff] }
  0x25   : > { %1840 = vmatprep.mubr.msk.f32.mxu0 %vm321_vm0, %v299_v38  ;;  %1890 = vmatprep.mubr.msk.f32.mxu1 %vm321_vm0, %v657_v39  ;;  %v676_v32 = vld [vmem:[%s2694_s3 + $0xe8] sm:$0xff]  ;;  %v1363_v34 = vld [vmem:[%s2696_s5 + $0x20] sm:$0xff]  ;;  %v319_v35 = vld [vmem:[%s2693_s2 + $0xf0] sm:$0xff] }
  0x26   : > { %1148 = vperm.xlu1 %1933, %v1054_v42   ;;  %1143 = vperm.xlu0 %1932, %v1053_v43   ;;  %v1364_v33 = vld [vmem:[%s2696_s5 + $0x28] sm:$0xff]  ;;  %v677_v36 = vld [vmem:[%s2694_s3 + $0xf0] sm:$0xff]  ;;  %v320_v37 = vld [vmem:[%s2693_s2 + $0xf8] sm:$0xff] }
  0x27   : > { %v678_v38 = vld [vmem:[%s2694_s3 + $0xf8] sm:$0xff]  ;;  %v1367_v42 = vld [vmem:[%s2696_s5 + $0x40] sm:$0xff] }
  0x28   : > { %1841 = vmatmul.mubr.msk.f32.gmra.mrb[10].mxu0 %vm321_vm0, %v300_v40  ;;  %1891 = vmatmul.mubr.msk.f32.gmra.mrb[10].mxu1 %vm321_vm0, %v658_v41  ;;  %v1366_v39 = vld [vmem:[%s2696_s5 + $0x38] sm:$0xff]  ;;  %v1365_v40 = vld [vmem:[%s2696_s5 + $0x30] sm:$0xff]  ;;  %v1368_v41 = vld [vmem:[%s2696_s5 + $0x48] sm:$0xff] }
  0x29   : > { %1843 = vmatprep.mubr.msk.f32.mxu0 %vm321_vm0, %v301_v44  ;;  %1893 = vmatprep.mubr.msk.f32.mxu1 %vm321_vm0, %v659_v45  ;;  %v1370_v43 = vld [vmem:[%s2696_s5 + $0x58] sm:$0xff]  ;;  %v1369_v44 = vld [vmem:[%s2696_s5 + $0x50] sm:$0xff]  ;;  %v1372_v45 = vld [vmem:[%s2696_s5 + $0x68] sm:$0xff] }
  0x2a   : > { %1158 = vperm.xlu1 %1933, %v1056_v48   ;;  %1153 = vperm.xlu0 %1932, %v1055_v49   ;;  %v1373_v48 = vld [vmem:[%s2696_s5 + $0x70] sm:$0xff]  ;;  %v1376_v49 = vld [vmem:[%s2696_s5 + $0x88] sm:$0xff] }
  0x2c   : > { %1844 = vmatmul.mubr.msk.f32.gmra.mrb[12].mxu0 %vm321_vm0, %v302_v46  ;;  %1894 = vmatmul.mubr.msk.f32.gmra.mrb[12].mxu1 %vm321_vm0, %v660_v47  ;;  %v1371_v46 = vld [vmem:[%s2696_s5 + $0x60] sm:$0xff]  ;;  %v1374_v47 = vld [vmem:[%s2696_s5 + $0x78] sm:$0xff] }
  0x2d   : > { %1846 = vmatprep.mubr.msk.f32.mxu0 %vm321_vm0, %v303_v50  ;;  %1896 = vmatprep.mubr.msk.f32.mxu1 %vm321_vm0, %v661_v51  ;;  %v1375_v50 = vld [vmem:[%s2696_s5 + $0x80] sm:$0xff]  ;;  %v1378_v51 = vld [vmem:[%s2696_s5 + $0x98] sm:$0xff] }
  0x2e   : > { %1168 = vperm.xlu1 %1933, %v1058_v54   ;;  %1163 = vperm.xlu0 %1932, %v1057_v55   ;;  %v1379_v54 = vld [vmem:[%s2696_s5 + $0xa0] sm:$0xff]  ;;  %v1382_v55 = vld [vmem:[%s2696_s5 + $0xb8] sm:$0xff] }
  0x30   : > { %1847 = vmatmul.mubr.msk.f32.gmra.mrb[14].mxu0 %vm321_vm0, %v304_v52  ;;  %1897 = vmatmul.mubr.msk.f32.gmra.mrb[14].mxu1 %vm321_vm0, %v662_v53  ;;  %v1377_v52 = vld [vmem:[%s2696_s5 + $0x90] sm:$0xff]  ;;  %v1380_v53 = vld [vmem:[%s2696_s5 + $0xa8] sm:$0xff] }
  0x31   : > { %1849 = vmatprep.mubr.msk.f32.mxu0 %vm321_vm0, %v305_v56  ;;  %1899 = vmatprep.mubr.msk.f32.mxu1 %vm321_vm0, %v663_v57  ;;  %v1381_v56 = vld [vmem:[%s2696_s5 + $0xb0] sm:$0xff]  ;;  %v1384_v57 = vld [vmem:[%s2696_s5 + $0xc8] sm:$0xff] }
  0x32   : > { %1178 = vperm.xlu1 %1933, %v1060_v60   ;;  %1173 = vperm.xlu0 %1932, %v1059_v61   ;;  %v1067_v60 = vld [vmem:[%s2695_s4 + $0xe0] sm:$0xff]  ;;  %v1386_v61 = vld [vmem:[%s2696_s5 + $0xd8] sm:$0xff] }
  0x34   : > { %1850 = vmatmul.mubr.msk.f32.gmra.mrb[16].mxu0 %vm321_vm0, %v306_v58  ;;  %1900 = vmatmul.mubr.msk.f32.gmra.mrb[16].mxu1 %vm321_vm0, %v664_v59  ;;  %v1383_v58 = vld [vmem:[%s2696_s5 + $0xc0] sm:$0xff]  ;;  %v1385_v59 = vld [vmem:[%s2696_s5 + $0xd0] sm:$0xff] }
  0x35   : > { %1852 = vmatprep.mubr.msk.f32.mxu0 %vm321_vm0, %v307_v62  ;;  %1902 = vmatprep.mubr.msk.f32.mxu1 %vm321_vm0, %v665_v63  ;;  %v1068_v62 = vld [vmem:[%s2695_s4 + $0xe8] sm:$0xff]  ;;  %v1387_v63 = vld [vmem:[%s2696_s5 + $0xe0] sm:$0xff] }
  0x36   : > { %1188 = vperm.xlu1 %1933, %v1062_v2   ;;  %1183 = vperm.xlu0 %1932, %v1061_v3   ;;  %v1070_v2 = vld [vmem:[%s2695_s4 + $0xf8] sm:$0xff] }
  0x37   : > { %v1390_v3 = vld [vmem:[%s2696_s5 + $0xf8] sm:$0xff] }
  0x38   : > { %1853 = vmatmul.mubr.msk.f32.gmra.mrb[18].mxu0 %vm321_vm0, %v308_v0  ;;  %1903 = vmatmul.mubr.msk.f32.gmra.mrb[18].mxu1 %vm321_vm0, %v666_v1  ;;  %v1069_v0 = vld [vmem:[%s2695_s4 + $0xf0] sm:$0xff]  ;;  %v1388_v1 = vld [vmem:[%s2696_s5 + $0xe8] sm:$0xff] }
  0x39   : > { %1855 = vmatprep.mubr.msk.f32.mxu0 %vm321_vm0, %v309_v4  ;;  %1905 = vmatprep.mubr.msk.f32.mxu1 %vm321_vm0, %v667_v5  ;;  %v1389_v4 = vld [vmem:[%s2696_s5 + $0xf0] sm:$0xff] }
  0x3a   : > { %1198 = vperm.xlu1 %1933, %v1064_v9   ;;  %1193 = vperm.xlu0 %1932, %v1063_v10  }
  0x3c   : > { %1856 = vmatmul.mubr.msk.f32.gmra.mrb[20].mxu0 %vm321_vm0, %v310_v6  ;;  %1906 = vmatmul.mubr.msk.f32.gmra.mrb[20].mxu1 %vm321_vm0, %v668_v7 }
  0x3d   : > { %1858 = vmatprep.mubr.msk.f32.mxu0 %vm321_vm0, %v311_v11  ;;  %1908 = vmatprep.mubr.msk.f32.mxu1 %vm321_vm0, %v669_v12 }
  0x3e   : > { %1208 = vperm.xlu1 %1933, %v1066_v15   ;;  %1203 = vperm.xlu0 %1932, %v1065_v16  }
  0x40   : > { %1859 = vmatmul.mubr.msk.f32.gmra.mrb[22].mxu0 %vm321_vm0, %v312_v13  ;;  %1909 = vmatmul.mubr.msk.f32.gmra.mrb[22].mxu1 %vm321_vm0, %v670_v14 }
  0x41   : > { %1861 = vmatprep.mubr.msk.f32.mxu0 %vm321_vm0, %v313_v17  ;;  %1911 = vmatprep.mubr.msk.f32.mxu1 %vm321_vm0, %v671_v18 }
  0x42   : > { %1398 = vperm.xlu1 %1933, %v1360_v21   ;;  %1393 = vperm.xlu0 %1932, %v1359_v22  }
  0x44   : > { %1862 = vmatmul.mubr.msk.f32.gmra.mrb[24].mxu0 %vm321_vm0, %v314_v19  ;;  %1912 = vmatmul.mubr.msk.f32.gmra.mrb[24].mxu1 %vm321_vm0, %v672_v20 }
  0x45   : > { %1864 = vmatprep.mubr.msk.f32.mxu0 %vm321_vm0, %v315_v23  ;;  %1914 = vmatprep.mubr.msk.f32.mxu1 %vm321_vm0, %v673_v24 }
  0x46   : > { %1408 = vperm.xlu1 %1933, %v1362_v27   ;;  %1403 = vperm.xlu0 %1932, %v1361_v28  }
  0x48   : > { %1865 = vmatmul.mubr.msk.f32.gmra.mrb[26].mxu0 %vm321_vm0, %v316_v25  ;;  %1915 = vmatmul.mubr.msk.f32.gmra.mrb[26].mxu1 %vm321_vm0, %v674_v26 }
  0x49   : > { %1867 = vmatprep.mubr.msk.f32.mxu0 %vm321_vm0, %v317_v29  ;;  %1917 = vmatprep.mubr.msk.f32.mxu1 %vm321_vm0, %v675_v30 }
  0x4a   : > { %1418 = vperm.xlu1 %1933, %v1364_v33   ;;  %1413 = vperm.xlu0 %1932, %v1363_v34  }
  0x4c   : > { %1868 = vmatmul.mubr.msk.f32.gmra.mrb[28].mxu0 %vm321_vm0, %v318_v31  ;;  %1918 = vmatmul.mubr.msk.f32.gmra.mrb[28].mxu1 %vm321_vm0, %v676_v32 }
  0x4d   : > { %1870 = vmatprep.mubr.msk.f32.mxu0 %vm321_vm0, %v319_v35  ;;  %1920 = vmatprep.mubr.msk.f32.mxu1 %vm321_vm0, %v677_v36 }
  0x4e   : > { %1428 = vperm.xlu1 %1933, %v1366_v39   ;;  %1423 = vperm.xlu0 %1932, %v1365_v40  }
  0x50   : > { %1871 = vmatmul.mubr.msk.f32.gmra.mrb[30].mxu0 %vm321_vm0, %v320_v37  ;;  %1921 = vmatmul.mubr.msk.f32.gmra.mrb[30].mxu1 %vm321_vm0, %v678_v38 }
  0x52   : > { %1438 = vperm.xlu1 %1933, %v1368_v41   ;;  %1433 = vperm.xlu0 %1932, %v1367_v42  }
  0x56   : > { %1448 = vperm.xlu1 %1933, %v1370_v43   ;;  %1443 = vperm.xlu0 %1932, %v1369_v44   ;;  %v1002_v43 = vlaneseq }
  0x58   : > { %v1003_v44 = vshrl.u32 %v1002_v43, 7 }
  0x5a   : > { %1458 = vperm.xlu1 %1933, %v1372_v45   ;;  %1453 = vperm.xlu0 %1932, %v1371_v46  }
  0x5e   : > { %1468 = vperm.xlu1 %1933, %v1374_v47   ;;  %1463 = vperm.xlu0 %1932, %v1373_v48   ;;  %v1004_v47 = vsub.s32 0, %v1003_v44 }
  0x62   : > { %1478 = vperm.xlu1 %1933, %v1376_v49   ;;  %1473 = vperm.xlu0 %1932, %v1375_v50   ;;  %v2529_v50 = vrot.slane %v2024_v8, %v1004_v47 }
  0x64   : > { %vm1006_vm3 = vcmp.eq.s32.totalorder %v2529_v50, 1 }
  0x66   : > { %1488 = vperm.xlu1 %1933, %v1378_v51   ;;  %1483 = vperm.xlu0 %1932, %v1377_v52  }
  0x6a   : > { %1498 = vperm.xlu1 %1933, %v1380_v53   ;;  %1493 = vperm.xlu0 %1932, %v1379_v54  }
  0x6e   : > { %1508 = vperm.xlu1 %1933, %v1382_v55   ;;  %1503 = vperm.xlu0 %1932, %v1381_v56  }
  0x72   : > { %1518 = vperm.xlu1 %1933, %v1384_v57   ;;  %1513 = vperm.xlu0 %1932, %v1383_v58  }
  0x76   : > { %1523 = vperm.xlu1 %1933, %v1385_v59   ;;  %1213 = vperm.xlu0 %1932, %v1067_v60  }
  0x7a   : > { %1528 = vperm.xlu1 %1933, %v1386_v61   ;;  %1218 = vperm.xlu0 %1932, %v1068_v62  }
  0x7e   : > { %1533 = vperm.xlu1 %1933, %v1387_v63   ;;  %1223 = vperm.xlu0 %1932, %v1069_v0  }
  0x82   : > { %1538 = vperm.xlu1 %1933, %v1388_v1   ;;  %1228 = vperm.xlu0 %1932, %v1070_v2  }
  0x86   : > { %1548 = vperm.xlu1 %1933, %v1390_v3   ;;  %1543 = vperm.xlu0 %1932, %v1389_v4  }
  0x87   : > { %v2454_v5 = vpop.permute.xlu1 %1083  ;;  %v1074_v6 = vpop.permute.xlu0 %1073 }
  0x8b   : > { %v2456_v7 = vpop.permute.xlu1 %1088  ;;  %v1079_v9 = vpop.permute.xlu0 %1078 }
  0x8f   : > { %v2458_v10 = vpop.permute.xlu1 %1098  ;;  %v2460_v11 = vpop.permute.xlu0 %1093 }
  0x95   : > { %v2462_v12 = vpop.permute.xlu1 %1108  ;;  %v2464_v13 = vpop.permute.xlu0 %1103 }
  0x99   : > { %v2466_v14 = vpop.permute.xlu1 %1118  ;;  %v2468_v15 = vpop.permute.xlu0 %1113 }
  0x9d   : > { %v2470_v16 = vpop.permute.xlu1 %1128  ;;  %v2472_v17 = vpop.permute.xlu0 %1123 }
  0xa1   : > { %v2474_v18 = vpop.permute.xlu1 %1138  ;;  %v2476_v19 = vpop.permute.xlu0 %1133 }
  0xa5   : > { %v2478_v20 = vpop.permute.xlu1 %1148  ;;  %v2480_v21 = vpop.permute.xlu0 %1143 }
  0xa9   : > { %v2482_v22 = vpop.permute.xlu1 %1158  ;;  %v2484_v23 = vpop.permute.xlu0 %1153 }
  0xad   : > { %v2486_v24 = vpop.permute.xlu1 %1168  ;;  %v2488_v25 = vpop.permute.xlu0 %1163 }
  0xb1   : > { %v2490_v26 = vpop.permute.xlu1 %1178  ;;  %v2492_v27 = vpop.permute.xlu0 %1173 }
  0xb5   : > { %v2494_v28 = vpop.permute.xlu1 %1188  ;;  %v2496_v29 = vpop.permute.xlu0 %1183 }
  0xb9   : > { %v2498_v30 = vpop.permute.xlu1 %1198  ;;  %v2500_v31 = vpop.permute.xlu0 %1193 }
  0xbd   : > { %v2502_v32 = vpop.permute.xlu1 %1208  ;;  %v2504_v33 = vpop.permute.xlu0 %1203 }
  0xc1   : > { %v1399_v34 = vpop.permute.xlu1 %1398  ;;  %v1394_v35 = vpop.permute.xlu0 %1393 }
  0xc5   : > { %v2506_v36 = vpop.permute.xlu1 %1408  ;;  %v2508_v37 = vpop.permute.xlu0 %1403 }
  0xc9   : > { %v2510_v38 = vpop.permute.xlu0 %1413  ;;  %v2512_v39 = vpop.permute.xlu1 %1418 }
  0xcd   : > { %v2514_v40 = vpop.permute.xlu0 %1423  ;;  %v2516_v41 = vpop.permute.xlu1 %1428 }
  0xd1   : > { %v2518_v42 = vpop.permute.xlu0 %1433  ;;  %v2520_v45 = vpop.permute.xlu1 %1438 }
  0xd5   : > { %v2522_v46 = vpop.permute.xlu0 %1443  ;;  %v2524_v48 = vpop.permute.xlu1 %1448 }
  0xd9   : > { %v2526_v49 = vpop.permute.xlu0 %1453  ;;  %v2532_v51 = vpop.permute.xlu1 %1458 }
  0xdd   : > { %v2534_v52 = vpop.permute.xlu0 %1463  ;;  %v2540_v63 = vpop.permute.xlu1 %1468 }
  0xe1   : > { %v2542_v0 = vpop.permute.xlu0 %1473 }
  0xe7   : > { %v1827_v53 = vpop.f32.mrb[0].mxu0  ;;  %v1877_v54 = vpop.f32.mrb[0].mxu1 }
  0xe8   : > { %v1008_v55 = vsel %vm1006_vm3, %v1827_v53, %v1877_v54  ;;  %v488_v57 = vpop.f32.mrb[1].mxu0  ;;  %v841_v58 = vpop.f32.mrb[1].mxu1 }
  0xe9   : > { %v1232_v56 = vadd.f32 %v1079_v9, %v1008_v55  ;;  %v1007_v59 = vsel %vm1006_vm3, %v488_v57, %v841_v58 }
  0xea   : > { %v1231_v60 = vadd.f32 %v1074_v6, %v1007_v59 }
  0xeb   : > { %vm1264_vm4 = vcmp.ge.f32.partialorder %v1232_v56, 0.0  ;;  %v1296_v8 = vmul.f32 0.01, %v1232_v56  ;;  %v1830_v61 = vpop.f32.mrb[2].mxu0  ;;  %v1880_v62 = vpop.f32.mrb[2].mxu1 }
  0xec   : > { %v1010_v1 = vsel %vm1006_vm3, %v1830_v61, %v1880_v62  ;;  %vm1263_vm5 = vcmp.ge.f32.partialorder %v1231_v60, 0.0  ;;  %v1295_v3 = vmul.f32 0.01, %v1231_v60  ;;  %v498_v9 = vpop.f32.mrb[3].mxu0  ;;  %v851_v43 = vpop.f32.mrb[3].mxu1 }
  0xed   : > { %v1328_v2 = vsel %vm1264_vm4, %v1232_v56, %v1296_v8  ;;  %v1234_v4 = vadd.f32 %v2456_v7, %v1010_v1  ;;  %v1009_v6 = vsel %vm1006_vm3, %v498_v9, %v851_v43  ;;  %v2553_v61 = vpop.permute.xlu1 %1478  ;;  %v2555_v62 = vpop.permute.xlu0 %1483 }
  0xee   : > { %v1552_v44 = vmul.f32 %v1399_v34, %v1328_v2  ;;  %v1327_v47 = vsel %vm1263_vm5, %v1231_v60, %v1295_v3  ;;  %v1233_v54 = vadd.f32 %v2454_v5, %v1009_v6 }
  0xef   : > { %v1298_v53 = vmul.f32 0.01, %v1234_v4  ;;  %v1833_v55 = vpop.f32.mrb[4].mxu0  ;;  %v1883_v57 = vpop.f32.mrb[4].mxu1  ;;  %v1551_v58 = vmul.f32 %v1394_v35, %v1327_v47  ;;  %vm1266_vm6 = vcmp.ge.f32.partialorder %v1234_v4, 0.0 }
  0xf0   : > { %v1012_v56 = vsel %vm1006_vm3, %v1833_v55, %v1883_v57  ;;  %vm1265_vm7 = vcmp.ge.f32.partialorder %v1233_v54, 0.0  ;;  %v1297_v59 = vmul.f32 0.01, %v1233_v54  ;;  %v508_v8 = vpop.f32.mrb[5].mxu0  ;;  %v861_v34 = vpop.f32.mrb[5].mxu1 }
  0xf1   : > { %v1236_v7 = vadd.f32 %v2458_v10, %v1012_v56  ;;  %v1583_v60 = vadd.f32 %v1552_v44, %v1551_v58  ;;  %v1011_v5 = vsel %vm1006_vm3, %v508_v8, %v861_v34  ;;  %v1330_v1 = vsel %vm1266_vm6, %v1234_v4, %v1298_v53  ;;  %v2568_v34 = vpop.permute.xlu1 %1488 }
  0xf2   : > { %v1329_v35 = vsel %vm1265_vm7, %v1233_v54, %v1297_v59  ;;  %v1235_v3 = vadd.f32 %v2460_v11, %v1011_v5  ;;  %v1554_v4 = vmul.f32 %v2506_v36, %v1330_v1  ;;  %v2570_v5 = vpop.permute.xlu0 %1493 }
  0xf3   : > { %v1300_v2 = vmul.f32 0.01, %v1236_v7  ;;  %v1836_v9 = vpop.f32.mrb[6].mxu0  ;;  %v1886_v43 = vpop.f32.mrb[6].mxu1  ;;  %v1553_v6 = vmul.f32 %v2508_v37, %v1329_v35  ;;  %vm1268_vm8 = vcmp.ge.f32.partialorder %v1236_v7, 0.0 }
  0xf4   : > { %v1014_v10 = vsel %vm1006_vm3, %v1836_v9, %v1886_v43  ;;  %vm1267_vm9 = vcmp.ge.f32.partialorder %v1235_v3, 0.0  ;;  %v1299_v47 = vmul.f32 0.01, %v1235_v3  ;;  %v518_v55 = vpop.f32.mrb[7].mxu0  ;;  %v871_v57 = vpop.f32.mrb[7].mxu1 }
  0xf5   : > { %v1238_v44 = vadd.f32 %v2462_v12, %v1014_v10  ;;  %v1584_v53 = vadd.f32 %v1583_v60, %v1553_v6  ;;  %v1013_v11 = vsel %vm1006_vm3, %v518_v55, %v871_v57  ;;  %v1332_v54 = vsel %vm1268_vm8, %v1236_v7, %v1300_v2 }
  0xf6   : > { %v1331_v58 = vsel %vm1267_vm9, %v1235_v3, %v1299_v47  ;;  %v1237_v37 = vadd.f32 %v2464_v13, %v1013_v11  ;;  %v1556_v13 = vmul.f32 %v2512_v39, %v1332_v54 }
  0xf7   : > { %v1302_v56 = vmul.f32 0.01, %v1238_v44  ;;  %v1839_v59 = vpop.f32.mrb[8].mxu0  ;;  %v1889_v8 = vpop.f32.mrb[8].mxu1  ;;  %v1555_v12 = vmul.f32 %v2510_v38, %v1331_v58  ;;  %v1585_v35 = vadd.f32 %v1584_v53, %v1554_v4  ;;  %vm1270_vm10 = vcmp.ge.f32.partialorder %v1238_v44, 0.0 }
  0xf8   : > { %v1016_v36 = vsel %vm1006_vm3, %v1839_v59, %v1889_v8  ;;  %vm1269_vm11 = vcmp.ge.f32.partialorder %v1237_v37, 0.0  ;;  %v1301_v60 = vmul.f32 0.01, %v1237_v37  ;;  %v528_v1 = vpop.f32.mrb[9].mxu0  ;;  %v881_v2 = vpop.f32.mrb[9].mxu1 }
  0xf9   : > { %v1240_v7 = vadd.f32 %v2466_v14, %v1016_v36  ;;  %v1586_v3 = vadd.f32 %v1585_v35, %v1555_v12  ;;  %v1015_v9 = vsel %vm1006_vm3, %v528_v1, %v881_v2  ;;  %v1334_v43 = vsel %vm1270_vm10, %v1238_v44, %v1302_v56  ;;  %v2584_v44 = vpop.permute.xlu1 %1498  ;;  %v2586_v58 = vpop.permute.xlu0 %1503 }
  0xfa   : > { %v1333_v6 = vsel %vm1269_vm11, %v1237_v37, %v1301_v60  ;;  %v1239_v10 = vadd.f32 %v2468_v15, %v1015_v9  ;;  %v1558_v15 = vmul.f32 %v2516_v41, %v1334_v43 }
  0xfb   : > { %v1304_v38 = vmul.f32 0.01, %v1240_v7  ;;  %v1842_v47 = vpop.f32.mrb[10].mxu0  ;;  %v1892_v55 = vpop.f32.mrb[10].mxu1  ;;  %v1557_v57 = vmul.f32 %v2514_v40, %v1333_v6  ;;  %v1587_v4 = vadd.f32 %v1586_v3, %v1556_v13  ;;  %vm1272_vm12 = vcmp.ge.f32.partialorder %v1240_v7, 0.0 }
  0xfc   : > { %v1018_v14 = vsel %vm1006_vm3, %v1842_v47, %v1892_v55  ;;  %vm1271_vm13 = vcmp.ge.f32.partialorder %v1239_v10, 0.0  ;;  %v1303_v39 = vmul.f32 0.01, %v1239_v10  ;;  %v538_v11 = vpop.f32.mrb[11].mxu0  ;;  %v891_v54 = vpop.f32.mrb[11].mxu1 }
  0xfd   : > { %v1242_v53 = vadd.f32 %v2470_v16, %v1018_v14  ;;  %v1588_v56 = vadd.f32 %v1587_v4, %v1557_v57  ;;  %v1017_v40 = vsel %vm1006_vm3, %v538_v11, %v891_v54  ;;  %v1336_v37 = vsel %vm1272_vm12, %v1240_v7, %v1304_v38  ;;  %v2600_v55 = vpop.permute.xlu1 %1508  ;;  %v2602_v57 = vpop.permute.xlu0 %1513 }
  0xfe   : > { %v1335_v59 = vsel %vm1271_vm13, %v1239_v10, %v1303_v39  ;;  %v1241_v12 = vadd.f32 %v2472_v17, %v1017_v40  ;;  %v1560_v7 = vmul.f32 %v2520_v45, %v1336_v37 }
  0xff   : > { %v1306_v8 = vmul.f32 0.01, %v1242_v53  ;;  %v1845_v35 = vpop.f32.mrb[12].mxu0  ;;  %v1895_v36 = vpop.f32.mrb[12].mxu1  ;;  %v1559_v16 = vmul.f32 %v2518_v42, %v1335_v59  ;;  %v1589_v60 = vadd.f32 %v1588_v56, %v1558_v15  ;;  %vm1274_vm14 = vcmp.ge.f32.partialorder %v1242_v53, 0.0 }
 0x100   : > { %v1020_v1 = vsel %vm1006_vm3, %v1845_v35, %v1895_v36  ;;  %vm1273_vm15 = vcmp.ge.f32.partialorder %v1241_v12, 0.0  ;;  %v1305_v41 = vmul.f32 0.01, %v1241_v12  ;;  %v548_v13 = vpop.f32.mrb[13].mxu0  ;;  %v901_v3 = vpop.f32.mrb[13].mxu1 }
 0x101   : > { %v1244_v2 = vadd.f32 %v2474_v18, %v1020_v1  ;;  %v1590_v9 = vadd.f32 %v1589_v60, %v1559_v16  ;;  %v1019_v17 = vsel %vm1006_vm3, %v548_v13, %v901_v3  ;;  %v1338_v43 = vsel %vm1274_vm14, %v1242_v53, %v1306_v8  ;;  %v2616_v1 = vpop.permute.xlu1 %1518 }
 0x102   : > { %v1337_v6 = vsel %vm1273_vm15, %v1241_v12, %v1305_v41  ;;  %v1243_v38 = vadd.f32 %v2476_v19, %v1019_v17  ;;  %v1562_v19 = vmul.f32 %v2524_v48, %v1338_v43  ;;  %v2618_v41 = vpop.permute.xlu0 %1213 }
 0x103   : > { %v1308_v42 = vmul.f32 0.01, %v1244_v2  ;;  %v1848_v10 = vpop.f32.mrb[14].mxu0  ;;  %v1898_v47 = vpop.f32.mrb[14].mxu1  ;;  %v1561_v18 = vmul.f32 %v2522_v46, %v1337_v6  ;;  %v1591_v4 = vadd.f32 %v1590_v9, %v1560_v7  ;;  %vm1276_vm0 = vcmp.ge.f32.partialorder %v1244_v2, 0.0 }
 0x104   : > { %v1022_v45 = vsel %vm1006_vm3, %v1848_v10, %v1898_v47  ;;  %vm1275_vm1 = vcmp.ge.f32.partialorder %v1243_v38, 0.0  ;;  %v1307_v14 = vmul.f32 0.01, %v1243_v38  ;;  %v558_v53 = vpop.f32.mrb[15].mxu0  ;;  %v911_v11 = vpop.f32.mrb[15].mxu1 }
 0x105   : > { %v1246_v39 = vadd.f32 %v2478_v20, %v1022_v45  ;;  %v1592_v54 = vadd.f32 %v1591_v4, %v1561_v18  ;;  %v1021_v15 = vsel %vm1006_vm3, %v558_v53, %v911_v11  ;;  %v1340_v56 = vsel %vm1276_vm0, %v1244_v2, %v1308_v42 }
 0x106   : > { %v1339_v40 = vsel %vm1275_vm1, %v1243_v38, %v1307_v14  ;;  %v1245_v37 = vadd.f32 %v2480_v21, %v1021_v15  ;;  %v1564_v21 = vmul.f32 %v2532_v51, %v1340_v56 }
 0x107   : > { %v1310_v46 = vmul.f32 0.01, %v1246_v39  ;;  %v1851_v59 = vpop.f32.mrb[16].mxu0  ;;  %v1901_v8 = vpop.f32.mrb[16].mxu1  ;;  %v1563_v12 = vmul.f32 %v2526_v49, %v1339_v40  ;;  %v1593_v35 = vadd.f32 %v1592_v54, %v1562_v19  ;;  %vm1278_vm2 = vcmp.ge.f32.partialorder %v1246_v39, 0.0 }
 0x108   : > { %v1024_v20 = vsel %vm1006_vm3, %v1851_v59, %v1901_v8  ;;  %vm1277_vm4 = vcmp.ge.f32.partialorder %v1245_v37, 0.0  ;;  %v1309_v48 = vmul.f32 0.01, %v1245_v37  ;;  %v568_v16 = vpop.f32.mrb[17].mxu0  ;;  %v921_v60 = vpop.f32.mrb[17].mxu1 }
 0x109   : > { %v1248_v36 = vadd.f32 %v2482_v22, %v1024_v20  ;;  %v1594_v2 = vadd.f32 %v1593_v35, %v1563_v12  ;;  %v1023_v49 = vsel %vm1006_vm3, %v568_v16, %v921_v60  ;;  %v1342_v13 = vsel %vm1278_vm2, %v1246_v39, %v1310_v46  ;;  %v2636_v46 = vpop.permute.xlu1 %1523 }
 0x10a   : > { %v1341_v3 = vsel %vm1277_vm4, %v1245_v37, %v1309_v48  ;;  %v1247_v9 = vadd.f32 %v2484_v23, %v1023_v49  ;;  %v1566_v18 = vmul.f32 %v2540_v63, %v1342_v13  ;;  %v2638_v37 = vpop.permute.xlu0 %1218 }
 0x10b   : > { %v1312_v7 = vmul.f32 0.01, %v1248_v36  ;;  %v1854_v17 = vpop.f32.mrb[18].mxu0  ;;  %v1904_v43 = vpop.f32.mrb[18].mxu1  ;;  %v1565_v22 = vmul.f32 %v2534_v52, %v1341_v3  ;;  %v1595_v6 = vadd.f32 %v1594_v2, %v1564_v21  ;;  %vm1280_vm5 = vcmp.ge.f32.partialorder %v1248_v36, 0.0 }
 0x10c   : > { %v1026_v42 = vsel %vm1006_vm3, %v1854_v17, %v1904_v43  ;;  %v578_v38 = vpop.f32.mrb[19].mxu0  ;;  %v931_v51 = vpop.f32.mrb[19].mxu1  ;;  %vm1279_vm6 = vcmp.ge.f32.partialorder %v1247_v9, 0.0  ;;  %v1311_v10 = vmul.f32 0.01, %v1247_v9 }
 0x10d   : > { %v1250_v47 = vadd.f32 %v2486_v24, %v1026_v42  ;;  %v1596_v4 = vadd.f32 %v1595_v6, %v1565_v22  ;;  %v1025_v23 = vsel %vm1006_vm3, %v578_v38, %v931_v51  ;;  %v1344_v45 = vsel %vm1280_vm5, %v1248_v36, %v1312_v7 }
 0x10e   : > { %v1343_v14 = vsel %vm1279_vm6, %v1247_v9, %v1311_v10  ;;  %v1249_v39 = vadd.f32 %v2488_v25, %v1025_v23  ;;  %v1568_v25 = vmul.f32 %v2553_v61, %v1344_v45 }
 0x10f   : > { %v1314_v52 = vmul.f32 0.01, %v1250_v47  ;;  %v1857_v53 = vpop.f32.mrb[20].mxu0  ;;  %v1907_v11 = vpop.f32.mrb[20].mxu1  ;;  %v1567_v19 = vmul.f32 %v2542_v0, %v1343_v14  ;;  %v1597_v54 = vadd.f32 %v1596_v4, %v1566_v18  ;;  %vm1282_vm7 = vcmp.ge.f32.partialorder %v1250_v47, 0.0 }
 0x110   : > { %v1028_v24 = vsel %vm1006_vm3, %v1857_v53, %v1907_v11  ;;  %v588_v15 = vpop.f32.mrb[21].mxu0  ;;  %v941_v63 = vpop.f32.mrb[21].mxu1  ;;  %vm1281_vm8 = vcmp.ge.f32.partialorder %v1249_v39, 0.0  ;;  %v1313_v56 = vmul.f32 0.01, %v1249_v39 }
 0x111   : > { %v1252_v40 = vadd.f32 %v2490_v26, %v1028_v24  ;;  %v1598_v59 = vadd.f32 %v1597_v54, %v1567_v19  ;;  %v1027_v0 = vsel %vm1006_vm3, %v588_v15, %v941_v63  ;;  %v1346_v8 = vsel %vm1282_vm7, %v1250_v47, %v1314_v52  ;;  %v1529_v47 = vpop.permute.xlu1 %1528  ;;  %v2656_v18 = vpop.permute.xlu0 %1223 }
 0x112   : > { %v1345_v12 = vsel %vm1281_vm8, %v1249_v39, %v1313_v56  ;;  %v1251_v20 = vadd.f32 %v2492_v27, %v1027_v0  ;;  %v1570_v13 = vmul.f32 %v2568_v34, %v1346_v8 }
 0x113   : > { %v1316_v35 = vmul.f32 0.01, %v1252_v40  ;;  %v1860_v48 = vpop.f32.mrb[22].mxu0  ;;  %v1910_v36 = vpop.f32.mrb[22].mxu1  ;;  %v1569_v16 = vmul.f32 %v2555_v62, %v1345_v12  ;;  %v1599_v26 = vadd.f32 %v1598_v59, %v1568_v25  ;;  %vm1284_vm9 = vcmp.ge.f32.partialorder %v1252_v40, 0.0 }
 0x114   : > { %v1030_v60 = vsel %vm1006_vm3, %v1860_v48, %v1910_v36  ;;  %v598_v21 = vpop.f32.mrb[23].mxu0  ;;  %v951_v61 = vpop.f32.mrb[23].mxu1  ;;  %vm1283_vm10 = vcmp.ge.f32.partialorder %v1251_v20, 0.0  ;;  %v1315_v2 = vmul.f32 0.01, %v1251_v20 }
 0x115   : > { %v1254_v49 = vadd.f32 %v2494_v28, %v1030_v60  ;;  %v1600_v3 = vadd.f32 %v1599_v26, %v1569_v16  ;;  %v1029_v27 = vsel %vm1006_vm3, %v598_v21, %v951_v61  ;;  %v1348_v7 = vsel %vm1284_vm9, %v1252_v40, %v1316_v35  ;;  %v1534_v48 = vpop.permute.xlu1 %1533  ;;  %v1229_v26 = vpop.permute.xlu0 %1228 }
 0x116   : > { %v1347_v9 = vsel %vm1283_vm10, %v1251_v20, %v1315_v2  ;;  %v1253_v17 = vadd.f32 %v2496_v29, %v1029_v27  ;;  %v1572_v29 = vmul.f32 %v2584_v44, %v1348_v7 }
 0x117   : > { %v1318_v62 = vmul.f32 0.01, %v1254_v49  ;;  %v1863_v43 = vpop.f32.mrb[24].mxu0  ;;  %v1913_v22 = vpop.f32.mrb[24].mxu1  ;;  %v1571_v6 = vmul.f32 %v2570_v5, %v1347_v9  ;;  %v1601_v42 = vadd.f32 %v1600_v3, %v1570_v13  ;;  %vm1286_vm11 = vcmp.ge.f32.partialorder %v1254_v49, 0.0 }
 0x118   : > { %v1032_v28 = vsel %vm1006_vm3, %v1863_v43, %v1913_v22  ;;  %v608_v38 = vpop.f32.mrb[25].mxu0  ;;  %v961_v34 = vpop.f32.mrb[25].mxu1  ;;  %vm1285_vm12 = vcmp.ge.f32.partialorder %v1253_v17, 0.0  ;;  %v1317_v51 = vmul.f32 0.01, %v1253_v17 }
 0x119   : > { %v1256_v10 = vadd.f32 %v2498_v30, %v1032_v28  ;;  %v1602_v4 = vadd.f32 %v1601_v42, %v1571_v6  ;;  %v1031_v5 = vsel %vm1006_vm3, %v608_v38, %v961_v34  ;;  %v1350_v23 = vsel %vm1286_vm11, %v1254_v49, %v1318_v62 }
 0x11a   : > { %v1349_v45 = vsel %vm1285_vm12, %v1253_v17, %v1317_v51  ;;  %v1255_v52 = vadd.f32 %v2500_v31, %v1031_v5  ;;  %v1574_v63 = vmul.f32 %v2600_v55, %v1350_v23  ;;  %v1544_v5 = vpop.permute.xlu0 %1543 }
 0x11b   : > { %v1320_v14 = vmul.f32 0.01, %v1256_v10  ;;  %v1866_v39 = vpop.f32.mrb[26].mxu0  ;;  %v1916_v53 = vpop.f32.mrb[26].mxu1  ;;  %v1573_v11 = vmul.f32 %v2586_v58, %v1349_v45  ;;  %v1603_v19 = vadd.f32 %v1602_v4, %v1572_v29  ;;  %vm1288_vm13 = vcmp.ge.f32.partialorder %v1256_v10, 0.0 }
 0x11c   : > { %v1034_v30 = vsel %vm1006_vm3, %v1866_v39, %v1916_v53  ;;  %v618_v54 = vpop.f32.mrb[27].mxu0  ;;  %v971_v44 = vpop.f32.mrb[27].mxu1  ;;  %vm1287_vm14 = vcmp.ge.f32.partialorder %v1255_v52, 0.0  ;;  %v1319_v24 = vmul.f32 0.01, %v1255_v52 }
 0x11d   : > { %v1258_v15 = vadd.f32 %v2502_v32, %v1034_v30  ;;  %v1604_v56 = vadd.f32 %v1603_v19, %v1573_v11  ;;  %v1033_v31 = vsel %vm1006_vm3, %v618_v54, %v971_v44  ;;  %v1352_v40 = vsel %vm1288_vm13, %v1256_v10, %v1320_v14 }
 0x11e   : > { %v1351_v25 = vsel %vm1287_vm14, %v1255_v52, %v1319_v24  ;;  %v1257_v59 = vadd.f32 %v2504_v33, %v1033_v31  ;;  %v1576_v60 = vmul.f32 %v2616_v1, %v1352_v40  ;;  %v1621_v44 = vstv %s1620_s25 }
 0x11f   : > { %v1322_v58 = vmul.f32 0.01, %v1258_v15  ;;  %v1869_v0 = vpop.f32.mrb[28].mxu0  ;;  %v1919_v8 = vpop.f32.mrb[28].mxu1  ;;  %v1575_v12 = vmul.f32 %v2602_v57, %v1351_v25  ;;  %v1605_v35 = vadd.f32 %v1604_v56, %v1574_v63  ;;  %vm1290_vm15 = vcmp.ge.f32.partialorder %v1258_v15, 0.0 }
 0x120   : > { %v1036_v32 = vsel %vm1006_vm3, %v1869_v0, %v1919_v8  ;;  %v628_v20 = vpop.f32.mrb[29].mxu0  ;;  %v981_v55 = vpop.f32.mrb[29].mxu1  ;;  %vm1289_vm0 = vcmp.ge.f32.partialorder %v1257_v59, 0.0  ;;  %v1321_v36 = vmul.f32 0.01, %v1257_v59 }
 0x121   : > { %v1260_v16 = vadd.f32 %v2638_v37, %v1036_v32  ;;  %v1606_v33 = vadd.f32 %v1605_v35, %v1575_v12  ;;  %v1035_v21 = vsel %vm1006_vm3, %v628_v20, %v981_v55  ;;  %v1354_v57 = vsel %vm1290_vm15, %v1258_v15, %v1322_v58 }
 0x122   : > { %v1353_v61 = vsel %vm1289_vm0, %v1257_v59, %v1321_v36  ;;  %v1259_v49 = vadd.f32 %v2618_v41, %v1035_v21  ;;  %v1578_v43 = vmul.f32 %v1529_v47, %v1354_v57  ;;  %v1539_v41 = vpop.permute.xlu1 %1538 }
 0x123   : > { %v1324_v2 = vmul.f32 0.01, %v1260_v16  ;;  %v1872_v13 = vpop.f32.mrb[30].mxu0  ;;  %v1922_v3 = vpop.f32.mrb[30].mxu1  ;;  %v1577_v27 = vmul.f32 %v2636_v46, %v1353_v61  ;;  %v1607_v7 = vadd.f32 %v1606_v33, %v1576_v60  ;;  %vm1292_vm1 = vcmp.ge.f32.partialorder %v1260_v16, 0.0 }
 0x124   : > { %v1038_v37 = vsel %vm1006_vm3, %v1872_v13, %v1922_v3  ;;  %v638_v9 = vpop.f32.mrb[31].mxu0  ;;  %v991_v1 = vpop.f32.mrb[31].mxu1  ;;  %vm1291_vm2 = vcmp.ge.f32.partialorder %v1259_v49, 0.0  ;;  %v1323_v62 = vmul.f32 0.01, %v1259_v49 }
 0x125   : > { %v1262_v17 = vadd.f32 %v1229_v26, %v1038_v37  ;;  %v1608_v22 = vadd.f32 %v1607_v7, %v1577_v27  ;;  %v1037_v6 = vsel %vm1006_vm3, %v638_v9, %v991_v1  ;;  %v1356_v42 = vsel %vm1292_vm1, %v1260_v16, %v1324_v2 }
 0x126   : > { %v1355_v28 = vsel %vm1291_vm2, %v1259_v49, %v1323_v62  ;;  %v1261_v46 = vadd.f32 %v2656_v18, %v1037_v6  ;;  %v1580_v29 = vmul.f32 %v1539_v41, %v1356_v42  ;;  %v1549_v14 = vpop.permute.xlu1 %1548 }
 0x127   : > { %v1326_v38 = vmul.f32 0.01, %v1262_v17  ;;  %v1579_v34 = vmul.f32 %v1534_v48, %v1355_v28  ;;  %v1609_v51 = vadd.f32 %v1608_v22, %v1578_v43  ;;  %vm1294_vm4 = vcmp.ge.f32.partialorder %v1262_v17, 0.0 }
 0x128   : > { %vm1293_vm5 = vcmp.ge.f32.partialorder %v1261_v46, 0.0  ;;  %v1325_v10 = vmul.f32 0.01, %v1261_v46 }
 0x129   : > { %v1610_v4 = vadd.f32 %v1609_v51, %v1579_v34  ;;  %v1358_v23 = vsel %vm1294_vm4, %v1262_v17, %v1326_v38 }
 0x12a   : > { %v1357_v47 = vsel %vm1293_vm5, %v1261_v46, %v1325_v10  ;;  %v1582_v52 = vmul.f32 %v1549_v14, %v1358_v23 }
 0x12b   : > { %v1581_v45 = vmul.f32 %v1544_v5, %v1357_v47  ;;  %v1611_v50 = vadd.f32 %v1610_v4, %v1580_v29 }
 0x12d   : > { %v1612_v39 = vadd.f32 %v1611_v50, %v1581_v45 }
 0x12f   : > { %v1613_v53 = vadd.f32 %v1612_v39, %v1582_v52 }
 0x131   : > { %v1614_v11 = vrot.slane %v1613_v53, 4 }
 0x133   : > { %v1615_v18 = vadd.f32 %v1614_v11, %v1613_v53 }
 0x135   : > { %v1616_v19 = vrot.slane %v1615_v18, 2 }
 0x137   : > { %v1617_v30 = vadd.f32 %v1616_v19, %v1615_v18 }
 0x139   : > { %v1618_v54 = vrot.slane %v1617_v30, 1 }
 0x13b   : > { %v1619_v24 = vadd.f32 %v1618_v54, %v1617_v30 }
 0x13d   : > { %v1622_v15 = vadd.f32 %v1621_v44, %v1619_v24 }
 0x13f   : > { %vm1623_vm3 = vcmp.ge.f32.partialorder %v1622_v15, 0.0  ;;  %v1624_v63 = vmul.f32 0.01, %v1622_v15 }
 0x141   : > { %v1625_v56 = vsel %vm1623_vm3, %v1622_v15, %v1624_v63 }
 0x142   : > { %1626 = vst [vmem:[%s286_s6] sm:$0x1] %v1625_v56 }
 0x143 PF: > { %s18_s26 = sadd.s32 1, %s1940_s26  }
 0x144   : > { %p15_p4 = scmp.ge.s32.totalorder %s18_s26, 4  }
 0x146   :  { %17 = sbr.rel (!%p15_p4) target bundleno = 2 (0x2), region = 81 }

</bundles_post_ra>
